<compile_context>
chip_gen: v7x
topology: tpu7x:2x2x1
jax: 0.10.0
libtpu: 0.0.40
codegen_flags: <defaults>
</compile_context>

<pallas_src>
import functools

import jax
import jax.numpy as jnp
import numpy as np
from jax.experimental import pallas as pl
from jax.experimental.pallas import tpu as pltpu


def _round_up(x, m):
    return ((x + m - 1) // m) * m


# ---------------------------------------------------------------------------
# Kernels
# ---------------------------------------------------------------------------
def _transition_kernel_repk(x_ref, w_ref, b_ref, o_ref):
    """Pure DMA + MXU form: 2x2 pooling absorbed into a 4x-replicated-K weight.

    x_ref: (1, TS, 4*Cin) bf16   w_ref: (4*Cin, CoutP) bf16
    b_ref: (1, CoutP)     f32    o_ref: (1, TS, CoutP) bf16
    """
    y = jnp.dot(x_ref[0], w_ref[...], preferred_element_type=jnp.float32)
    o_ref[0] = (y + b_ref[...]).astype(o_ref.dtype)


def _transition_kernel_pooled(x_ref, w_ref, b_ref, o_ref, *, cin):
    """Small-K form (Cin % 128 == 0): three bf16 VPU adds on aligned lane slices + matmul.

    x_ref: (1, TS, 4*Cin) bf16   w_ref: (Cin, CoutP) bf16
    b_ref: (1, CoutP)     f32    o_ref: (1, TS, CoutP) bf16
    """
    x = x_ref[0]                                                   # bf16, no f32 upcast
    pooled = (x[:, 0 * cin:1 * cin] + x[:, 1 * cin:2 * cin]) + \
             (x[:, 2 * cin:3 * cin] + x[:, 3 * cin:4 * cin])       # (TS, Cin) bf16
    y = jnp.dot(pooled, w_ref[...], preferred_element_type=jnp.float32)
    o_ref[0] = (y + b_ref[...]).astype(o_ref.dtype)


# ---------------------------------------------------------------------------
# Tile selection
# ---------------------------------------------------------------------------
def _pick_spatial_tile(s, n, in_lanes, out_lanes, target=1024, vmem_budget=24 << 20):
    """Spatial tile: multiple of 16 (bf16 sublane packing), bounded by a VMEM budget,
    shrunk if the grid would be too small to feed both v7x TensorCores."""
    def step_bytes(t):
        # double-buffered bf16 input + bf16 output tiles, resident weight + bias
        return (2 * t * in_lanes * 2) + (2 * t * out_lanes * 2) \
            + (in_lanes * out_lanes * 2) + out_lanes * 4

    ts = _round_up(min(target, _round_up(s, 16)), 16)
    while ts > 16 and step_bytes(ts) > vmem_budget:
        ts -= 16
    # keep both megacore TCs busy when N and S are tiny
    while ts >= 32 and (ts // 2) % 16 == 0 and n * pl.cdiv(s, ts) < 4:
        ts //= 2
    return ts, step_bytes(ts)


# ---------------------------------------------------------------------------
# Wrapper
# ---------------------------------------------------------------------------
@jax.jit
def transition_forward(x_nchw, gamma, beta, running_mean, running_var, conv_w, eps=1e-5):
    """x_nchw: (N, Cin, H, W) -> (N, Cout, H//2, W//2), matching PyTorch Transition (eval)."""
    N, Cin, H, W = x_nchw.shape
    Cout = conv_w.shape[0]
    # Matches AvgPool2d(2,2) floor behavior only for even H/W; assert instead of silently dropping.
    assert H % 2 == 0 and W % 2 == 0, "Transition kernel expects even H and W"
    Ho, Wo = H // 2, W // 2
    S = Ho * Wo
    CoutP = _round_up(Cout, 128)            # lane-dense (unmasked) output stores

    # ---- fold BatchNorm (running stats) + the 0.25 pooling factor into the 1x1 conv ----
    scale = gamma / jnp.sqrt(running_var + eps)                          # (Cin,)
    shift = beta - running_mean * scale                                  # (Cin,)
    w_f32 = conv_w.reshape(Cout, Cin).T.astype(jnp.float32)              # (Cin, Cout)
    w_fold = 0.25 * (scale[:, None] * w_f32)                             # (Cin, Cout) f32
    bias = shift[None, :].astype(jnp.float32) @ w_f32                    # (1, Cout)  f32

    pooled_sum_form = (Cin % 128 == 0)
    if pooled_sum_form:
        # small-K matmul, pooling as bf16 adds in-kernel (preferred on v5e / large Cin)
        w_mat = w_fold.astype(jnp.bfloat16)                              # (Cin, Cout)
        kernel = functools.partial(_transition_kernel_pooled, cin=Cin)
    else:
        # 4x-replicated K: pooling absorbed into the matmul (pure DMA + MXU kernel)
        w_mat = jnp.concatenate([w_fold] * 4, axis=0).astype(jnp.bfloat16)  # (4*Cin, Cout)
        kernel = _transition_kernel_repk
    K = w_mat.shape[0]
    if CoutP != Cout:
        w_mat = jnp.pad(w_mat, ((0, 0), (0, CoutP - Cout)))
        bias = jnp.pad(bias, ((0, 0), (0, CoutP - Cout)))

    # ---- lay the 2x2 window members of each pooled pixel on the lane axis (bf16) ----
    # (N,Cin,H,W) -> (N,Cin,Ho,2,Wo,2) -> (N,Ho,Wo,2,2,Cin) -> (N, Ho*Wo, 4*Cin)
    xw = x_nchw.astype(jnp.bfloat16).reshape(N, Cin, Ho, 2, Wo, 2)
    xw = jnp.transpose(xw, (0, 2, 4, 3, 5, 1))
    x_flat = xw.reshape(N, S, 4 * Cin)

    ts, step_bytes = _pick_spatial_tile(S, N, 4 * Cin, CoutP)
    S_pad = _round_up(S, ts)
    if S_pad != S:
        x_flat = jnp.pad(x_flat, ((0, 0), (0, S_pad - S), (0, 0)))
    grid = (N, S_pad // ts)

    # Explicit VMEM limit: v5e default scoped VMEM is 16 MiB; v7x physical VMEM is 64 MiB.
    vmem_limit = int(min(64 << 20, max(2 * step_bytes, 16 << 20)))

    out_flat = pl.pallas_call(
        kernel,
        out_shape=jax.ShapeDtypeStruct((N, S_pad, CoutP), jnp.bfloat16),
        grid_spec=pltpu.PrefetchScalarGridSpec(
            num_scalar_prefetch=0,
            grid=grid,
            in_specs=[
                pl.BlockSpec((1, ts, 4 * Cin), lambda n, s: (n, s, 0)),
                pl.BlockSpec((K, CoutP), lambda n, s: (0, 0)),
                pl.BlockSpec((1, CoutP), lambda n, s: (0, 0)),
            ],
            out_specs=pl.BlockSpec((1, ts, CoutP), lambda n, s: (n, s, 0)),
        ),
        compiler_params=pltpu.CompilerParams(
            dimension_semantics=("parallel", "parallel"),
            vmem_limit_bytes=vmem_limit),
    )(x_flat, w_mat, bias)

    # (N, S_pad, CoutP) -> crop padding -> NCHW f32 (module contract)
    out = out_flat[:, :S, :Cout].reshape(N, Ho, Wo, Cout)
    return out.transpose(0, 3, 1, 2).astype(jnp.float32)


def transition_reference(x_nchw, gamma, beta, running_mean, running_var, conv_w, eps=1e-5):
    """Pure-JAX f32 reference of the same (eval-mode) forward pass."""
    scale = gamma / jnp.sqrt(running_var + eps)
    shift = beta - running_mean * scale
    xb = x_nchw * scale[None, :, None, None] + shift[None, :, None, None]
    y = jnp.einsum("nchw,oc->nohw", xb, conv_w.reshape(conv_w.shape[0], conv_w.shape[1]))
    N, Co, H, W = y.shape
    y = y.reshape(N, Co, H // 2, 2, W // 2, 2).mean(axis=(3, 5))
    return y


def _make_inputs(key, n, cin, cout, h, w):
    ks = jax.random.split(key, 6)
    x = jax.random.normal(ks[0], (n, cin, h, w), dtype=jnp.float32)
    gamma = 1.0 + 0.1 * jax.random.normal(ks[1], (cin,), dtype=jnp.float32)
    beta = 0.1 * jax.random.normal(ks[2], (cin,), dtype=jnp.float32)
    running_mean = 0.05 * jax.random.normal(ks[3], (cin,), dtype=jnp.float32)
    running_var = jnp.abs(1.0 + 0.1 * jax.random.normal(ks[4], (cin,), dtype=jnp.float32))
    conv_w = jax.random.normal(ks[5], (cout, cin, 1, 1), dtype=jnp.float32) / np.sqrt(cin)
    return x, gamma, beta, running_mean, running_var, conv_w


if __name__ == "__main__":
    key = jax.random.PRNGKey(0)
    k_small, k_aligned = jax.random.split(key, 2)

    # Test 1: tiny, unaligned Cin -> 4x-replicated-K (pure DMA + MXU) kernel path.
    N, Cin, Cout, H, W = 2, 8, 4, 16, 16
    args = _make_inputs(k_small, N, Cin, Cout, H, W)
    out = jax.block_until_ready(transition_forward(*args))
    ref = transition_reference(*args)
    assert out.shape == (N, Cout, H // 2, W // 2), out.shape
    # bf16 activations/weights/output on the MXU -> relaxed tolerance vs. the f32 reference.
    np.testing.assert_allclose(np.asarray(out), np.asarray(ref), rtol=2e-2, atol=2e-2)

    # Test 2: Cin multiple of 128 -> pooled-sum (bf16 adds + small-K matmul) kernel path.
    N2, Cin2, Cout2, H2, W2 = 1, 128, 128, 8, 8
    args2 = _make_inputs(k_aligned, N2, Cin2, Cout2, H2, W2)
    out2 = jax.block_until_ready(transition_forward(*args2))
    ref2 = transition_reference(*args2)
    assert out2.shape == (N2, Cout2, H2 // 2, W2 // 2), out2.shape
    np.testing.assert_allclose(np.asarray(out2), np.asarray(ref2), rtol=3e-2, atol=3e-2)

    print("KERNEL_OK")
</pallas_src>

<mosaic_0001>
module attributes {stable_mosaic.version = 11 : i64} {
  func.func @_transition_kernel_repk(%arg0: i32, %arg1: i32, %arg2: memref<1x32x32xbf16, #tpu.memory_space<vmem>>, %arg3: memref<32x128xbf16, #tpu.memory_space<vmem>>, %arg4: memref<1x128xf32, #tpu.memory_space<vmem>>, %arg5: memref<1x32x128xbf16, #tpu.memory_space<vmem>>) attributes {dimension_semantics = [#tpu.dimension_semantics<parallel>, #tpu.dimension_semantics<parallel>], iteration_bounds = array<i64: 2, 2>, scalar_prefetch = 0 : i64, scratch_operands = 0 : i64, tpu.core_type = #tpu.core_type<tc>, window_params = [{transform_indices = @transform_0, window_bounds = array<i64: 1, 32, 32>}, {pipeline_mode = #tpu.pipeline_mode<synchronous>, transform_indices = @transform_1, window_bounds = array<i64: 32, 128>}, {pipeline_mode = #tpu.pipeline_mode<synchronous>, transform_indices = @transform_2, window_bounds = array<i64: 1, 128>}, {transform_indices = @transform_3, window_bounds = array<i64: 1, 32, 128>}]} {
    %c0 = arith.constant 0 : index
    %c0_0 = arith.constant 0 : index
    %c0_1 = arith.constant 0 : index
    %0 = vector.load %arg2[%c0, %c0_0, %c0_1] : memref<1x32x32xbf16, #tpu.memory_space<vmem>>, vector<1x32x32xbf16>
    %1 = vector.shape_cast %0 : vector<1x32x32xbf16> to vector<32x32xbf16>
    %c0_2 = arith.constant 0 : index
    %c0_3 = arith.constant 0 : index
    %2 = vector.load %arg3[%c0_2, %c0_3] : memref<32x128xbf16, #tpu.memory_space<vmem>>, vector<32x128xbf16>
    %cst = arith.constant dense<0.000000e+00> : vector<32x128xf32>
    %3 = tpu.matmul %1, %2, %cst {dimension_numbers = #tpu.dot_dimension_numbers<[1], [0], [0], [1], [0, 0, 1, 1], [], []>} : vector<32x32xbf16>, vector<32x128xbf16>, vector<32x128xf32> -> vector<32x128xf32>
    %c0_4 = arith.constant 0 : index
    %c0_5 = arith.constant 0 : index
    %4 = vector.load %arg4[%c0_4, %c0_5] : memref<1x128xf32, #tpu.memory_space<vmem>>, vector<1x128xf32>
    %5 = vector.broadcast %4 : vector<1x128xf32> to vector<32x128xf32>
    %6 = arith.addf %3, %5 : vector<32x128xf32>
    %7 = arith.truncf %6 : vector<32x128xf32> to vector<32x128xbf16>
    %c0_6 = arith.constant 0 : index
    %c0_7 = arith.constant 0 : index
    %c0_8 = arith.constant 0 : index
    %8 = vector.load %arg5[%c0_6, %c0_7, %c0_8] : memref<1x32x128xbf16, #tpu.memory_space<vmem>>, vector<1x32x128xbf16>
    %9 = vector.shape_cast %8 : vector<1x32x128xbf16> to vector<32x128xbf16>
    %10 = vector.shape_cast %7 : vector<32x128xbf16> to vector<1x32x128xbf16>
    tpu.vector_store %arg5[%c0_6, %c0_7, %c0_8], %10 {strides = array<i32>} : memref<1x32x128xbf16, #tpu.memory_space<vmem>>, vector<1x32x128xbf16>,
    return
  }
  func.func @transform_0(%arg0: i32, %arg1: i32) -> (i32, i32, i32) {
    %c0_i32 = arith.constant 0 : i32
    %c0_i32_0 = arith.constant 0 : i32
    return %arg0, %arg1, %c0_i32 : i32, i32, i32
  }
  func.func @transform_1(%arg0: i32, %arg1: i32) -> (i32, i32) {
    %c0_i32 = arith.constant 0 : i32
    %c0_i32_0 = arith.constant 0 : i32
    %c0_i32_1 = arith.constant 0 : i32
    return %c0_i32, %c0_i32_0 : i32, i32
  }
  func.func @transform_2(%arg0: i32, %arg1: i32) -> (i32, i32) {
    %c0_i32 = arith.constant 0 : i32
    %c0_i32_0 = arith.constant 0 : i32
    %c0_i32_1 = arith.constant 0 : i32
    return %c0_i32, %c0_i32_0 : i32, i32
  }
  func.func @transform_3(%arg0: i32, %arg1: i32) -> (i32, i32, i32) {
    %c0_i32 = arith.constant 0 : i32
    %c0_i32_0 = arith.constant 0 : i32
    return %arg0, %arg1, %c0_i32 : i32, i32, i32
  }
}

</mosaic_0001>

<bundles_post_ra>
// kernel: transition_forward.1
= control target key start
LH: loop header
LB: loop body
LE: loop exit
PB: predicated region body
PF: predicated region fallthrough
CT: control target
= control target key end

     0   :  { %s569_s12 = smov 0   ;;  %s571_s13 = smov 0   ;;  %s629_s0 = inlined_call_operand.vmem [shape: bf16[2,64,32], index: 0, kind: input, shape index: {}]   ;;  %s630_s1 = inlined_call_operand.vmem [shape: bf16[32,128], index: 1, kind: input, shape index: {}]   ;;  %s631_s2 = inlined_call_operand.vmem [shape: f32[1,128], index: 2, kind: input, shape index: {}]   ;;  %s632_s3 = inlined_call_operand.vmem [shape: bf16[2,64,128], index: 3, kind: output, shape index: {}]  }
   0x1   :  { %s573_s14 = smov 0   ;;  %s575_s15 = smov 0  }
   0x2   :  { %s577_s16 = smov 0  }
   0x3 LB: > { %s22_s17 = sadd.s32 1, %s539_s14  ;;  %s25_s18 = sadd.s32 1, %s543_s15  ;;  %s547_s16 = sphi %s577_s16, %s13_s16   ;;  %s543_s15 = sphi %s575_s15, %s636_s15   ;;  %s539_s14 = sphi %s573_s14, %s635_s14   ;;  %s535_s13 = sphi %s571_s13, %s634_s13   ;;  %s531_s12 = sphi %s569_s12, %s633_s12  }
   0x4   : > { %p23_p0 = scmp.ge.s32.totalorder %s22_s17, 2  ;;  %p418_p1 = scmp.ge.s32.totalorder %s547_s16, 1 }
   0x5   : > { %p158_p2 = scmp.lt.s32.totalorder %s547_s16, 5 }
   0x6   : > { %s638_s17 = smov (%p23_p0, %s22_s17), 0  ;;  %s640_s18 = smov (!%p23_p0, %s25_s18), %s543_s15 }
   0x7   : > { %p159_p3 = pnand %p418_p1, %p158_p2  ;;  %p27_p4 = scmp.ge.s32.totalorder %s640_s18, 2 }
   0x8   : > { %v505_v0 = vld [vmem:[%s630_s1] sm:$0xff] (!%p159_p3)   ;;  %s419_s21 = sshll.u32 (!%p159_p3), %s531_s12, 2  ;;  %v506_v1 = vld [vmem:[%s630_s1 + $0x8] sm:$0xff] (!%p159_p3)   ;;  %p191_p5 = scmp.lt.s32.totalorder (!%p159_p3), %s535_s13, 1  ;;  %vm248_vm0 = vcmask (!%p159_p3), 261120  }
   0x9   : > { %s642_s18 = smov (%p27_p4, %s640_s18), 0  ;;  %162 = sbr.rel (%p159_p3) target bundleno = 243 (0xf3), region = 32 }
   0xa   : > { %457 = vmatprep.subr.bf16.mxu0 (!%p159_p3), %v505_v0  ;;  %p193_p6 = scmp.lt.s32.totalorder (!%p159_p3), %s419_s21, 7  ;;  %v425_v5 = vld [vmem:[%s631_s2] ss:$0 sm:$0xff] (!%p159_p3) }
   0xb   : > { %458 = vmatpush3.bf16.msra.mxu0 (!%p159_p3), %v505_v0 }
   0xc   : > { %459 = vmatprep.subr.bf16.mxu0 (!%p159_p3), %v506_v1 }
   0xf   : > { %460 = vmatpush3.bf16.msra.mxu0 (!%p159_p3), %v506_v1 }
  0x10   : > { %s644_s13 = smov (!%p191_p5, %s535_s13), 1  ;;  %s646_s21 = smov (!%p193_p6, %s419_s21), 7 }
  0x11   : > { %s420_s24 = sshll.u32 %s644_s13, 3 }
  0x12   : > { %s196_s25 = sadd.s32 %s420_s24, %s646_s21 }
  0x13   : > { %s421_s26 = sshll.u32 %s196_s25, 2 }
  0x14   : > { %s198_s29 = scalar_lea.vmem %s629_s0, %s421_s26  ;;  %s208_s7 = scalar_lea.vmem %s632_s3, %s421_s26 }
  0x15   : > { %v507_v2 = vld [vmem:[%s198_s29] sm:$0xff]   ;;  %v508_v3 = vld [vmem:[%s198_s29 + $0x8] sm:$0xff]  }
  0x16   : > { %461 = vmatprep.mubr.msk.bf16.mxu0 %vm248_vm0, %v507_v2 }
  0x17   : > { %462 = vmatmul.mubr.msk.bf16.vlgmr.msra.gmra.mrb[0].mxu0 %vm248_vm0, %v508_v3 }
  0xea   : > { %v463_v4 = vpop.f32.mrb[0].mxu0 }
  0xeb   : > { %v289_v6 = vpop.f32.mrb[1].mxu0  ;;  %v298_v8 = vadd.f32 %v463_v4, %v425_v5 }
  0xec   : > { %v464_v7 = vpop.f32.mrb[2].mxu0  ;;  %v290_v11 = vadd.f32 %v425_v5, %v289_v6 }
  0xed   : > { %v301_v9 = vadd.f32 %v464_v7, %v425_v5  ;;  %v292_v10 = vpop.f32.mrb[3].mxu0 }
  0xee   : > { %v293_v12 = vadd.f32 %v425_v5, %v292_v10 }
  0xef   : > { %v450_v13 = vpack.c.bf16 %v301_v9, %v298_v8 }
  0xf0   : > { %v445_v14 = vpack.c.bf16 %v293_v12, %v290_v11 }
  0xf1   : > { %452 = vst [vmem:[%s208_s7 + $0x8] sm:$0xff] %v450_v13  }
  0xf2   : > { %446 = vst [vmem:[%s208_s7] sm:$0xff] %v445_v14  }
  0xf3 PF: > { %s13_s16 = sadd.s32 1, %s547_s16   ;;  %s633_s12 = smov %s539_s14 }
  0xf4   : > { %p10_p7 = scmp.ge.s32.totalorder %s13_s16, 6   ;;  %s634_s13 = smov %s543_s15 }
  0xf5   : > { %s635_s14 = smov %s638_s17  ;;  %s636_s15 = smov %s642_s18 }
  0xf6   :  { %12 = sbr.rel (!%p10_p7) target bundleno = 3 (0x3), region = 62 }

</bundles_post_ra>
